<compile_context>
chip_gen: v6e
topology: v6e:2x2x1
jax: 0.10.0
libtpu: 0.0.40
codegen_flags: <defaults>
</compile_context>

<pallas_src>
import jax
import jax.numpy as jnp
from jax.experimental import pallas as pl
from jax.experimental.pallas import tpu as pltpu

_MIB = 1024 * 1024
_TB_MAX = 1024                  # v6e tile sweep: 512 -> ~85%, 1024 -> ~86% of HBM roofline
_W_RESIDENT_BYTES = 4 * _MIB    # keep W fully VMEM-resident below this
_XLA_FALLBACK_SIZE = 1_000_000  # below B*Din*Dout threshold, plain XLA wins


def _round_up(x, m):
    return (x + m - 1) // m * m


# ----------------------------- kernels --------------------------------------


def _linear_resident_kernel(x_ref, w_ref, b_ref, o_ref):
    # x:(tb,Din)  w:(Din,Dout)  b:(1,Dout)  o:(tb,Dout); bias fused in f32.
    acc = jnp.dot(x_ref[...], w_ref[...], preferred_element_type=jnp.float32)
    o_ref[...] = (acc + b_ref[...]).astype(o_ref.dtype)


def _linear_tiled_kernel(x_ref, w_ref, b_ref, o_ref, acc_ref):
    # Grid (batch, N, K); K axis is the reduction -> f32 accumulator scratch.
    k = pl.program_id(2)

    @pl.when(k == 0)
    def _init():
        acc_ref[...] = jnp.zeros_like(acc_ref)

    acc_ref[...] += jnp.dot(x_ref[...], w_ref[...],
                            preferred_element_type=jnp.float32)

    @pl.when(k == pl.num_programs(2) - 1)
    def _finalize():
        o_ref[...] = (acc_ref[...] + b_ref[...]).astype(o_ref.dtype)


# --------------------------- tiling helpers ----------------------------------


def _batch_tile(B, itemsize):
    # Sublane multiple accounting for dtype packing (f32:8, bf16:16, int8:32).
    sub = max(8, 32 // max(int(itemsize), 1))
    if B <= sub:
        return B  # single full-extent block (always a legal block shape)
    # >= 2 grid steps so both v7x TensorCores get work; cap at _TB_MAX.
    return min(_TB_MAX, _round_up((B + 1) // 2, sub))


def _k_tile(Din):
    # Must divide Din exactly: OOB reads along a reduction axis would be
    # accumulated into valid output rows (correctness, not just perf).
    for t in (512, 256, 128):
        if Din % t == 0:
            return t
    return Din


def _n_tile(Dout):
    # >= 256 lanes fills the v6e/v7x 256-wide MXU N dimension and keeps the
    # output stores lane-dense / unmasked.
    for t in (256, 128):
        if Dout % t == 0:
            return t
    return Dout


def _vmem_limit(need_bytes):
    # Only raise above the smallest default scoped limit (v5e: 16 MiB); never
    # exceed the smallest physical VMEM (v7x per-TC: 64 MiB).
    if need_bytes <= 12 * _MIB:
        return None
    return int(min(max(need_bytes * 3 // 2, 16 * _MIB), 64 * _MIB))


# ----------------------------- entry point -----------------------------------


def pallas_linear(x, w, b, *, force_pallas=False,
                  max_resident_w_bytes=_W_RESIDENT_BYTES):
    """y = x @ w + b.   x:(B,Din), w:(Din,Dout), b:(Dout,) (bias kept in f32)."""
    B, Din = x.shape
    Dout = w.shape[1]
    assert w.shape[0] == Din and b.shape == (Dout,)
    out_dtype = x.dtype
    b2d = b.reshape(1, Dout).astype(jnp.float32)  # bias add stays in f32

    # Tiny problems: the pallas_call boundary (~us) dominates and sub-128-lane
    # outputs force masked vst.msk stores -> let XLA fuse it instead.
    if not force_pallas and B * Din * Dout < _XLA_FALLBACK_SIZE:
        acc = jnp.dot(x, w, preferred_element_type=jnp.float32)
        return (acc + b2d).astype(out_dtype)

    tb = _batch_tile(B, x.dtype.itemsize)
    nb = pl.cdiv(B, tb)  # ragged edge block handled by Pallas: no pad / slice
    w_bytes = Din * Dout * w.dtype.itemsize

    if w_bytes <= max_resident_w_bytes:
        # Path 1: W & bias VMEM-resident (single-buffered), x / out streamed
        # over the batch with double-buffered tiles.
        vmem_need = (2 * tb * Din * x.dtype.itemsize
                     + w_bytes + Dout * 4
                     + 2 * tb * Dout * out_dtype.itemsize)
        return pl.pallas_call(
            _linear_resident_kernel,
            out_shape=jax.ShapeDtypeStruct((B, Dout), out_dtype),
            grid=(nb,),
            in_specs=[
                pl.BlockSpec((tb, Din), lambda i: (i, 0)),       # streamed
                pl.BlockSpec((Din, Dout), lambda i: (0, 0),      # resident W
                             pipeline_mode=pl.Buffered(1)),
                pl.BlockSpec((1, Dout), lambda i: (0, 0),        # resident bias
                             pipeline_mode=pl.Buffered(1)),
            ],
            out_specs=pl.BlockSpec((tb, Dout), lambda i: (i, 0)),
            compiler_params=pltpu.CompilerParams(
                dimension_semantics=("parallel",),
                vmem_limit_bytes=_vmem_limit(vmem_need),
            ),
        )(x, w, b2d)

    # Path 2: large W -> also tile N and K (f32 accumulator, K "arbitrary").
    tk = _k_tile(Din)
    tn = _n_tile(Dout)
    nn = pl.cdiv(Dout, tn)
    nk = Din // tk
    vmem_need = (2 * tb * tk * x.dtype.itemsize
                 + 2 * tk * tn * w.dtype.itemsize
                 + 2 * tn * 4
                 + 2 * tb * tn * out_dtype.itemsize
                 + tb * tn * 4)
    return pl.pallas_call(
        _linear_tiled_kernel,
        out_shape=jax.ShapeDtypeStruct((B, Dout), out_dtype),
        grid=(nb, nn, nk),
        in_specs=[
            pl.BlockSpec((tb, tk), lambda i, j, k: (i, k)),
            pl.BlockSpec((tk, tn), lambda i, j, k: (k, j)),
            pl.BlockSpec((1, tn), lambda i, j, k: (0, j)),
        ],
        out_specs=pl.BlockSpec((tb, tn), lambda i, j, k: (i, j)),
        scratch_shapes=[pltpu.VMEM((tb, tn), jnp.float32)],
        compiler_params=pltpu.CompilerParams(
            dimension_semantics=("parallel", "parallel", "arbitrary"),
            vmem_limit_bytes=_vmem_limit(vmem_need),
        ),
    )(x, w, b2d)


# ----------------------------- module classes --------------------------------


class LinearModule:
    """Stand-in for the wrapped torch module (nn.Linear(in_features, out_features))."""

    def __init__(self, key, in_features, out_features, *,
                 param_dtype=jnp.float32, force_pallas=False,
                 max_resident_w_bytes=_W_RESIDENT_BYTES):
        kw, kb = jax.random.split(key)
        bound = 1.0 / jnp.sqrt(jnp.float32(in_features))
        # Stored already transposed (in, out) so the kernel computes x @ W.
        self.weight = jax.random.uniform(
            kw, (in_features, out_features), jnp.float32, -bound, bound
        ).astype(param_dtype)
        # Bias stays f32: it is fused into the f32 MXU accumulator.
        self.bias = jax.random.uniform(
            kb, (out_features,), jnp.float32, -bound, bound
        )
        self.force_pallas = force_pallas
        self.max_resident_w_bytes = max_resident_w_bytes

    def __call__(self, x):
        return pallas_linear(
            x, self.weight, self.bias,
            force_pallas=self.force_pallas,
            max_resident_w_bytes=self.max_resident_w_bytes,
        )


class ModuleWrapperIgnores2ndArg:
    """JAX/Pallas port of the torch wrapper: forward(x, dummy=None) -> module(x)."""

    def __init__(self, module):
        self.module = module

    def __call__(self, x, dummy=None):
        # `dummy` is intentionally ignored — that is the wrapper's entire point.
        return self.module(x)

    def __repr__(self):
        return repr(self.module)


# --------------------------------- demo ---------------------------------------


if __name__ == "__main__":
    root = jax.random.PRNGKey(0)
    k_a, k_b, k_c, k_d, kx_a, kx_b, kx_c, kx_d, k_dummy = jax.random.split(root, 9)
    dummy = jax.random.normal(k_dummy, (1,), jnp.float32)  # must be ignored

    # --- Case A: spec-sized tiny config (seq=8, hidden=32) -------------------
    # Auto-dispatch goes to plain XLA (overhead-dominated size); a second
    # module with identical params force-runs the Pallas kernel at this size.
    mod_a = LinearModule(k_a, 32, 32)
    mod_a_pl = LinearModule(k_a, 32, 32, force_pallas=True)
    wrap_a = ModuleWrapperIgnores2ndArg(mod_a)
    wrap_a_pl = ModuleWrapperIgnores2ndArg(mod_a_pl)
    x_a = jax.random.normal(kx_a, (8, 32), jnp.float32)
    ref_a = x_a @ mod_a.weight + mod_a.bias
    y_a = jax.block_until_ready(wrap_a(x_a, dummy))
    y_a_nodummy = jax.block_until_ready(wrap_a(x_a))
    y_a_pl = jax.block_until_ready(wrap_a_pl(x_a, dummy))
    assert y_a.shape == (8, 32)
    assert jnp.array_equal(y_a, y_a_nodummy)            # dummy truly ignored
    assert jnp.allclose(y_a, ref_a, atol=1e-5, rtol=1e-5)
    assert jnp.allclose(y_a_pl, ref_a, atol=1e-5, rtol=1e-5)

    # --- Case B: resident-W path, ragged batch (no pad/slice), 128-lane out --
    mod_b = LinearModule(k_b, 128, 128)
    wrap_b = ModuleWrapperIgnores2ndArg(mod_b)
    x_b = jax.random.normal(kx_b, (300, 128), jnp.float32)
    y_b = jax.block_until_ready(wrap_b(x_b, dummy))
    ref_b = x_b @ mod_b.weight + mod_b.bias
    assert y_b.shape == (300, 128)
    assert jnp.allclose(y_b, ref_b, atol=1e-4, rtol=1e-4)

    # --- Case C: N/K-tiled path (forced) with f32 accumulator, K reduction ---
    mod_c = LinearModule(k_c, 1024, 256, max_resident_w_bytes=0)
    wrap_c = ModuleWrapperIgnores2ndArg(mod_c)
    x_c = jax.random.normal(kx_c, (256, 1024), jnp.float32)
    y_c = jax.block_until_ready(wrap_c(x_c, dummy))
    ref_c = x_c @ mod_c.weight + mod_c.bias
    assert y_c.shape == (256, 256)
    assert jnp.allclose(y_c, ref_c, atol=2e-2, rtol=2e-2)

    # --- Case D: bf16 streaming flag (f32 accumulate + f32 bias inside) ------
    mod_d = LinearModule(k_d, 128, 128, param_dtype=jnp.bfloat16)
    wrap_d = ModuleWrapperIgnores2ndArg(mod_d)
    x_d = jax.random.normal(kx_d, (304, 128), jnp.float32).astype(jnp.bfloat16)
    y_d = jax.block_until_ready(wrap_d(x_d, dummy))
    ref_d = x_d.astype(jnp.float32) @ mod_d.weight.astype(jnp.float32) + mod_d.bias
    assert y_d.shape == (304, 128)
    assert y_d.dtype == jnp.bfloat16
    assert jnp.allclose(y_d.astype(jnp.float32), ref_d, atol=5e-2, rtol=5e-2)

    print("KERNEL_OK")
</pallas_src>

<mosaic_0001>
module attributes {stable_mosaic.version = 11 : i64} {
  func.func @_linear_resident_kernel(%arg0: i32, %arg1: memref<8x32xf32, #tpu.memory_space<vmem>>, %arg2: memref<32x32xf32, #tpu.memory_space<vmem>>, %arg3: memref<1x32xf32, #tpu.memory_space<vmem>>, %arg4: memref<8x32xf32, #tpu.memory_space<vmem>>) attributes {dimension_semantics = [#tpu.dimension_semantics<parallel>], iteration_bounds = array<i64: 1>, scalar_prefetch = 0 : i64, scratch_operands = 0 : i64, tpu.core_type = #tpu.core_type<tc>, window_params = [{transform_indices = @transform_0, window_bounds = array<i64: 8, 32>}, {pipeline_mode = #tpu.pipeline_mode<synchronous>, transform_indices = @transform_1, window_bounds = array<i64: 32, 32>}, {pipeline_mode = #tpu.pipeline_mode<synchronous>, transform_indices = @transform_2, window_bounds = array<i64: 1, 32>}, {transform_indices = @transform_3, window_bounds = array<i64: 8, 32>}]} {
    %c0 = arith.constant 0 : index
    %c0_0 = arith.constant 0 : index
    %0 = vector.load %arg1[%c0, %c0_0] : memref<8x32xf32, #tpu.memory_space<vmem>>, vector<8x32xf32>
    %c0_1 = arith.constant 0 : index
    %c0_2 = arith.constant 0 : index
    %1 = vector.load %arg2[%c0_1, %c0_2] : memref<32x32xf32, #tpu.memory_space<vmem>>, vector<32x32xf32>
    %cst = arith.constant dense<0.000000e+00> : vector<8x32xf32>
    %2 = tpu.matmul %0, %1, %cst {dimension_numbers = #tpu.dot_dimension_numbers<[1], [0], [0], [1], [0, 0, 1, 1], [], []>} : vector<8x32xf32>, vector<32x32xf32>, vector<8x32xf32> -> vector<8x32xf32>
    %c0_3 = arith.constant 0 : index
    %c0_4 = arith.constant 0 : index
    %3 = vector.load %arg3[%c0_3, %c0_4] : memref<1x32xf32, #tpu.memory_space<vmem>>, vector<1x32xf32>
    %4 = vector.broadcast %3 : vector<1x32xf32> to vector<8x32xf32>
    %5 = arith.addf %2, %4 : vector<8x32xf32>
    %c0_5 = arith.constant 0 : index
    %c0_6 = arith.constant 0 : index
    %6 = vector.load %arg4[%c0_5, %c0_6] : memref<8x32xf32, #tpu.memory_space<vmem>>, vector<8x32xf32>
    tpu.vector_store %arg4[%c0_5, %c0_6], %5 {strides = array<i32>} : memref<8x32xf32, #tpu.memory_space<vmem>>, vector<8x32xf32>,
    return
  }
  func.func @transform_0(%arg0: i32) -> (i32, i32) {
    %c0_i32 = arith.constant 0 : i32
    %c0_i32_0 = arith.constant 0 : i32
    return %arg0, %c0_i32 : i32, i32
  }
  func.func @transform_1(%arg0: i32) -> (i32, i32) {
    %c0_i32 = arith.constant 0 : i32
    %c0_i32_0 = arith.constant 0 : i32
    %c0_i32_1 = arith.constant 0 : i32
    return %c0_i32, %c0_i32_0 : i32, i32
  }
  func.func @transform_2(%arg0: i32) -> (i32, i32) {
    %c0_i32 = arith.constant 0 : i32
    %c0_i32_0 = arith.constant 0 : i32
    %c0_i32_1 = arith.constant 0 : i32
    return %c0_i32, %c0_i32_0 : i32, i32
  }
  func.func @transform_3(%arg0: i32) -> (i32, i32) {
    %c0_i32 = arith.constant 0 : i32
    %c0_i32_0 = arith.constant 0 : i32
    return %arg0, %c0_i32 : i32, i32
  }
}

</mosaic_0001>

<bundles_post_ra>
// kernel: tpu_custom_call.1
= control target key start
LH: loop header
LB: loop body
LE: loop exit
PB: predicated region body
PF: predicated region fallthrough
CT: control target
= control target key end

     0   :  { %8 = vsyncpa [#allocation3], 0  ;;  %s274_s0 = inlined_call_operand.hbm [shape: f32[8,32], index: 0, kind: input, shape index: {}]   ;;  %s275_s1 = inlined_call_operand.hbm [shape: f32[32,32], index: 1, kind: input, shape index: {}]   ;;  %s276_s2 = inlined_call_operand.vmem [shape: f32[1,32], index: 2, kind: input, shape index: {}]   ;;  %s277_s3 = inlined_call_operand.hbm [shape: f32[8,32], index: 3, kind: output, shape index: {}]  }
   0x1   :  { %9 = vsyncpa [#allocation6], 0 }
   0x2   :  { %10 = vsyncpa [#allocation4], 0  ;;  %s235_s12 = smov [#allocation2]   ;;  %s236_s14 = smov [#allocation5]  }
   0x3   :  { %s17_s13 = sshll.u32 %s235_s12, 4  ;;  %s26_s15 = sshll.u32 %s236_s14, 4  ;;  %s18_s13 = int_to_ptr.vmem [resolvable:$true] %s17_s13  ;;  %s27_s15 = int_to_ptr.vmem [resolvable:$true] %s26_s15 }
   0x4   :  { %s177_s16 = scalar_lea.vmem %s18_s13, 128  ;;  %p182_p1 = scmp.lt.s32.totalorder %s18_s13, %s18_s13 }
   0x5   :  { %p178_p0 = scmp.ne.s32.totalorder %s18_s13, %s177_s16  ;;  %p183_p2 = scmp.lt.s32.totalorder %s177_s16, %s177_s16 }
   0x7   :  { %p184_p3 = por %p183_p2, %p182_p1 }
   0x9   :  { %p185_p4 = pnand %p184_p3, %p178_p0 }
   0xb   :  { %188 = shalt.err (!%p185_p4)
}
   0xc   :  { %20 = dma.hbm_to_vmem [thread:$0]  %s274_s0, 128, %s18_s13, [#allocation3]  }
   0xd   :  { %s197_s19 = scalar_lea.vmem %s27_s15, 512  ;;  %p202_p6 = scmp.lt.s32.totalorder %s27_s15, %s27_s15 }
   0xe   :  { %p198_p5 = scmp.ne.s32.totalorder %s27_s15, %s197_s19  ;;  %p203_p7 = scmp.lt.s32.totalorder %s197_s19, %s197_s19 }
  0x10   :  { %p204_p8 = por %p203_p7, %p202_p6 }
  0x12   :  { %p205_p9 = pnand %p204_p8, %p198_p5 }
  0x14   :  { %208 = shalt.err (!%p205_p9)
}
  0x15   :  { %s237_s20 = smov 128   ;;  %s238_s21 = smov 8  }
  0x16   :  { %32 = dma.hbm_to_vmem [thread:$0]  %s275_s1, 512, %s27_s15, [#allocation6], %s237_s20, %s237_s20, %s238_s21  }
  0x17   :  { %229 = dma.done.wait [#allocation3], 128  }
  0x18   :  { %230 = vsyncadd [#allocation3], 4294967168 }
  0x19   :  { %231 = dma.done.wait [#allocation6], 512  }
  0x1a   :  { %232 = vsyncadd [#allocation6], 4294966784  ;;  %v239_v0 = vmov 0.0   ;;  %vm240_vm0 = vmmov 0   ;;  %v45_v1 = vld [vmem:[#allocation5 + $0x18] sm:$0xff]  ;;  %v44_v2 = vld [vmem:[#allocation5 + $0x10] sm:$0xff] }
  0x1b   :  { %151 = vmatprep.subr.mxu0 %v239_v0  ;;  %159 = vmatprep.mubr.msk.f32.mxu0 %vm240_vm0, %v239_v0  ;;  %v43_v3 = vld [vmem:[#allocation5 + $0x8] sm:$0xff]  ;;  %v42_v4 = vld [vmem:[#allocation5] sm:$0xff]  ;;  %v41_v5 = vld [vmem:[#allocation2] sm:$0xff]  ;;  %vm53_vm1 = vcmask 261120   ;;  %s241_s24 = smov [#allocation7]  }
  0x1c   :  { %152 = vmatpush3.msra.mxu0 %v45_v1  ;;  %v144_v6 = vld [vmem:[%s276_s2] ss:$0 sm:$0xff]  ;;  %s134_s25 = sshll.u32 %s241_s24, 4  ;;  %s135_s25 = int_to_ptr.vmem [resolvable:$true] %s134_s25 }
  0x1d   :  { %153 = vmatprep.subr.mxu0 %v239_v0  ;;  %s209_s26 = scalar_lea.vmem %s135_s25, 128  ;;  %p214_p11 = scmp.lt.s32.totalorder %s135_s25, %s135_s25 }
  0x1e   :  { %154 = vmatpush3.msra.mxu0 %v44_v2  ;;  %p210_p10 = scmp.ne.s32.totalorder %s135_s25, %s209_s26  ;;  %p215_p12 = scmp.lt.s32.totalorder %s209_s26, %s209_s26 }
  0x1f   :  { %155 = vmatprep.subr.mxu0 %v239_v0 }
  0x20   :  { %156 = vmatpush3.msra.mxu0 %v43_v3  ;;  %p216_p13 = por %p215_p12, %p214_p11 }
  0x21   :  { %157 = vmatprep.subr.mxu0 %v239_v0 }
  0x22   :  { %158 = vmatpush3.msra.mxu0 %v42_v4  ;;  %p217_p0 = pnand %p216_p13, %p210_p10 }
  0x23   :  { %160 = vmatmul.mubr.msk.f32.vlgmr.msra.gmra.mxu0 %vm53_vm1, %v41_v5 }
  0xe3   :  { %v123_v7 = vpop.f32.mrf.mxu0 }
  0xe4   :  { %v124_v8 = vadd.f32 %v144_v6, %v123_v7 }
  0xe5   :  { %v161_v9 = vpop.f32.mrf.mxu0 }
  0xe6   :  { %127 = vst.msk [vmem:[#allocation7] sm:$0xff] %vm53_vm1, %v124_v8 }
  0xe7   :  { %220 = shalt.err (!%p217_p0)
}
  0xe8   :  { %137 = dma.vmem_to_hbm [thread:$0]  %s135_s25, 128, %s277_s3, [#allocation4]  }
  0xe9   :  { %233 = dma.done.wait [#allocation4], 128  }
  0xea   :  { %234 = vsyncadd [#allocation4], 4294967168 }
  0xeb   :  { %141 = vsyncpa [#allocation3], 1 }
  0xec   :  { %142 = vsyncpa [#allocation6], 1 }
  0xed   :  { %143 = vsyncpa [#allocation4], 1 }

</bundles_post_ra>
